<compile_context>
chip_gen: v7x
topology: tpu7x:2x2x1
jax: 0.10.0
libtpu: 0.0.40
codegen_flags: <defaults>
</compile_context>

<pallas_src>
import jax
import jax.numpy as jnp
from jax.experimental import pallas as pl
from jax.experimental.pallas import tpu as pltpu


def _silu(x):
    return x * jax.nn.sigmoid(x)


def add_temb_silu_kernel(temb_ref, x_ref, o_ref):
    # temb_ref: (TR, 1)    per-row (batch*channel) timestep embedding
    # x_ref:    (TR, THW)  feature-map tile (rows = B*C, lanes = H*W)
    # o_ref:    (TR, THW)
    x = x_ref[...].astype(jnp.float32)
    temb = temb_ref[...].astype(jnp.float32)
    y = x + temb                      # broadcast over the lane (spatial) axis
    o_ref[...] = (y * jax.nn.sigmoid(y)).astype(o_ref.dtype)


def _pick_tile(total, base, cap):
    """Largest multiple of `base` that divides `total` and is <= cap.

    Falls back to the full extent (always a legal block size) when `total`
    is not a multiple of `base`.
    """
    if total % base != 0:
        return total
    best = base
    t = base
    limit = min(total, cap)
    while t <= limit:
        if total % t == 0:
            best = t
        t += base
    return best


def time_mlp_forward(x, t, w1, b1, w2, b2):
    """x: (B, C, H, W), t: (B, E). Weights stored as (in, out)."""
    B, C, H, W = x.shape
    HW = H * W
    R = B * C

    # ---- tiny MLP hoisted to plain JAX (one batched matmul pair) ----------
    h = _silu(jnp.dot(t, w1, preferred_element_type=jnp.float32) + b1)
    temb = jnp.dot(h, w2, preferred_element_type=jnp.float32) + b2     # (B, C)

    # ---- lay out the elementwise pass as a lane/sublane-dense 2-D slab ----
    x2d = x.reshape(R, HW)
    temb2d = temb.reshape(R, 1).astype(jnp.float32)

    # Lane tile: multiple of 128, 512-2048 preferred; row tile: multiple of 8.
    thw = _pick_tile(HW, 128, 2048)
    tr = _pick_tile(R, 8, 256)
    grid = (pl.cdiv(R, tr), pl.cdiv(HW, thw))

    # Explicit VMEM budget: double-buffered x + out tiles plus temb + slack.
    tile_bytes = tr * thw * jnp.dtype(x.dtype).itemsize
    vmem_limit = min(max(4 * tile_bytes + 4 * tr * 4 + (1 << 20), 4 << 20), 32 << 20)

    out2d = pl.pallas_call(
        add_temb_silu_kernel,
        out_shape=jax.ShapeDtypeStruct((R, HW), x.dtype),
        grid_spec=pltpu.PrefetchScalarGridSpec(
            num_scalar_prefetch=0,
            grid=grid,
            in_specs=[
                pl.BlockSpec((tr, 1), lambda i, j: (i, 0)),    # temb (per row)
                pl.BlockSpec((tr, thw), lambda i, j: (i, j)),  # x tile
            ],
            out_specs=pl.BlockSpec((tr, thw), lambda i, j: (i, j)),
        ),
        compiler_params=pltpu.CompilerParams(
            dimension_semantics=("parallel", "parallel"),
            vmem_limit_bytes=int(vmem_limit),
        ),
    )(temb2d, x2d)

    return out2d.reshape(B, C, H, W)


def reference_forward(x, t, w1, b1, w2, b2):
    h = _silu(t @ w1 + b1)
    temb = h @ w2 + b2                      # (B, C)
    y = x + temb[:, :, None, None]
    return _silu(y)


if __name__ == "__main__":
    # Small shapes consistent with the module's forward:
    #   x: (B, out_dim, H, W), t: (B, embedding_dim)
    B, E, Hd, C, H, W = 2, 8, 32, 4, 16, 16

    key = jax.random.PRNGKey(0)
    kx, kt, k1, k2, k3, k4 = jax.random.split(key, 6)

    x = jax.random.normal(kx, (B, C, H, W), dtype=jnp.float32)
    t = jax.random.normal(kt, (B, E), dtype=jnp.float32)

    # Deterministic synthetic parameters (Linear weights stored as (in, out)).
    w1 = jax.random.normal(k1, (E, Hd), dtype=jnp.float32) * 0.1
    b1 = jax.random.normal(k2, (Hd,), dtype=jnp.float32) * 0.1
    w2 = jax.random.normal(k3, (Hd, C), dtype=jnp.float32) * 0.1
    b2 = jax.random.normal(k4, (C,), dtype=jnp.float32) * 0.1

    out = time_mlp_forward(x, t, w1, b1, w2, b2)
    out = jax.block_until_ready(out)

    ref = reference_forward(x, t, w1, b1, w2, b2)
    assert out.shape == (B, C, H, W)
    assert jnp.allclose(out, ref, atol=1e-5, rtol=1e-5), "mismatch vs reference"

    print("KERNEL_OK")
</pallas_src>

<mosaic_0001>
module attributes {stable_mosaic.version = 11 : i64} {
  func.func @add_temb_silu_kernel(%arg0: i32, %arg1: i32, %arg2: memref<8x1xf32, #tpu.memory_space<vmem>>, %arg3: memref<8x256xf32, #tpu.memory_space<vmem>>, %arg4: memref<8x256xf32, #tpu.memory_space<vmem>>) attributes {dimension_semantics = [#tpu.dimension_semantics<parallel>, #tpu.dimension_semantics<parallel>], iteration_bounds = array<i64: 1, 1>, scalar_prefetch = 0 : i64, scratch_operands = 0 : i64, tpu.core_type = #tpu.core_type<tc>, window_params = [{transform_indices = @transform_0, window_bounds = array<i64: 8, 1>}, {transform_indices = @transform_1, window_bounds = array<i64: 8, 256>}, {transform_indices = @transform_2, window_bounds = array<i64: 8, 256>}]} {
    %c0 = arith.constant 0 : index
    %c0_0 = arith.constant 0 : index
    %0 = vector.load %arg3[%c0, %c0_0] : memref<8x256xf32, #tpu.memory_space<vmem>>, vector<8x256xf32>
    %c0_1 = arith.constant 0 : index
    %c0_2 = arith.constant 0 : index
    %1 = vector.load %arg2[%c0_1, %c0_2] : memref<8x1xf32, #tpu.memory_space<vmem>>, vector<8x1xf32>
    %2 = vector.broadcast %1 : vector<8x1xf32> to vector<8x256xf32>
    %3 = arith.addf %0, %2 : vector<8x256xf32>
    %4 = arith.negf %3 : vector<8x256xf32>
    %5 = math.exp %4 : vector<8x256xf32>
    %cst = arith.constant 1.000000e+00 : f32
    %6 = vector.broadcast %cst : f32 to vector<8x256xf32>
    %7 = arith.addf %6, %5 : vector<8x256xf32>
    %8 = arith.divf %6, %7 : vector<8x256xf32>
    %9 = arith.mulf %3, %8 : vector<8x256xf32>
    %c0_3 = arith.constant 0 : index
    %c0_4 = arith.constant 0 : index
    %10 = vector.load %arg4[%c0_3, %c0_4] : memref<8x256xf32, #tpu.memory_space<vmem>>, vector<8x256xf32>
    tpu.vector_store %arg4[%c0_3, %c0_4], %9 {strides = array<i32>} : memref<8x256xf32, #tpu.memory_space<vmem>>, vector<8x256xf32>,
    return
  }
  func.func @transform_0(%arg0: i32, %arg1: i32) -> (i32, i32) {
    %c0_i32 = arith.constant 0 : i32
    %c0_i32_0 = arith.constant 0 : i32
    return %arg0, %c0_i32 : i32, i32
  }
  func.func @transform_1(%arg0: i32, %arg1: i32) -> (i32, i32) {
    %c0_i32 = arith.constant 0 : i32
    return %arg0, %arg1 : i32, i32
  }
  func.func @transform_2(%arg0: i32, %arg1: i32) -> (i32, i32) {
    %c0_i32 = arith.constant 0 : i32
    return %arg0, %arg1 : i32, i32
  }
}

</mosaic_0001>

<bundles_post_ra>
// kernel: tpu_custom_call.1
= control target key start
LH: loop header
LB: loop body
LE: loop exit
PB: predicated region body
PF: predicated region fallthrough
CT: control target
= control target key end

     0   :  { %7 = vsyncpa [#allocation3], 0  ;;  %s172_s0 = inlined_call_operand.vmem [shape: f32[8,1], index: 0, kind: input, shape index: {}]   ;;  %s173_s1 = inlined_call_operand.hbm [shape: f32[8,256], index: 1, kind: input, shape index: {}]   ;;  %s174_s2 = inlined_call_operand.hbm [shape: f32[8,256], index: 2, kind: output, shape index: {}]  }
   0x1   :  { %8 = vsyncpa [#allocation4], 0  ;;  %s127_s9 = smov [#allocation2]   ;;  %s79_s13 = scalar_lea.hbm %s173_s1, 256 }
   0x2   :  { %s17_s10 = sshll.u32 %s127_s9, 4  ;;  %p80_p0 = scmp.ne.s32.totalorder %s173_s1, %s79_s13  ;;  %s18_s10 = int_to_ptr.vmem [resolvable:$true] %s17_s10 }
   0x3   :  { %p83_p1 = scmp.lt.u32.totalorder %s79_s13, %s173_s1 }
   0x5   :  { %p85_p2 = pnand %p83_p1, %p80_p0 }
   0x7   :  { %88 = shalt.err (!%p85_p2)
}
   0x8   :  { %s89_s18 = scalar_lea.vmem %s18_s10, 256  ;;  %p94_p4 = scmp.lt.s32.totalorder %s18_s10, %s18_s10 }
   0x9   :  { %p90_p3 = scmp.ne.s32.totalorder %s18_s10, %s89_s18  ;;  %p95_p5 = scmp.lt.s32.totalorder %s89_s18, %s89_s18 }
   0xb   :  { %p96_p6 = por %p95_p5, %p94_p4 }
   0xd   :  { %p97_p7 = pnand %p96_p6, %p90_p3 }
   0xf   :  { %100 = shalt.err (!%p97_p7)
}
  0x10   :  { %20 = dma.hbm_to_vmem [thread:$0]  %s173_s1, 256, %s18_s10, [#allocation3]  }
  0x11   :  { %123 = dma.done.wait [#allocation3], 256  }
  0x12   :  { %124 = vsyncadd [#allocation3], 4294967040  ;;  %v128_v0 = vmov 0   ;;  %v26_v1 = vld [vmem:[%s172_s0] sm:$0xff]  ;;  %v25_v3 = vld [vmem:[#allocation2 + $0x8] sm:$0xff]  ;;  %s129_s1 = smov [#allocation5]  }
  0x13   :  { %70 = vset.pattern.permute.xlu0 %v128_v0  ;;  %v24_v2 = vld [vmem:[#allocation2] sm:$0xff]  ;;  %s56_s23 = sshll.u32 %s129_s1, 4  ;;  %s57_s23 = int_to_ptr.vmem [resolvable:$true] %s56_s23 }
  0x14   :  { %29 = vperm.xlu0 %70, %v26_v1   ;;  %s101_s0 = scalar_lea.vmem %s57_s23, 256  ;;  %p106_p9 = scmp.lt.s32.totalorder %s57_s23, %s57_s23 }
  0x15   :  { %p102_p8 = scmp.ne.s32.totalorder %s57_s23, %s101_s0  ;;  %p107_p10 = scmp.lt.s32.totalorder %s101_s0, %s101_s0 }
  0x17   :  { %p108_p11 = por %p107_p10, %p106_p9 }
  0x19   :  { %p109_p12 = pnand %p108_p11, %p102_p8 }
  0x93   :  { %v30_v4 = vpop.permute.xlu0 %29 }
  0x94   :  { %v32_v5 = vadd.f32 %v30_v4, %v24_v2  ;;  %v33_v6 = vadd.f32 %v30_v4, %v25_v3 }
  0x96   :  { %v65_v7 = vmul.f32 -1.442695, %v32_v5  ;;  %v66_v8 = vmul.f32 -1.442695, %v33_v6 }
  0x98   :  { %71 = vpow2.f32 %v65_v7 }
  0x99   :  { %73 = vpow2.f32 %v66_v8 }
  0xa2   :  { %v72_v9 = vpop.eup %71 }
  0xa3   :  { %v74_v10 = vpop.eup %73  ;;  %v40_v11 = vadd.f32 1.0, %v72_v9 }
  0xa4   :  { %v41_v12 = vadd.f32 1.0, %v74_v10 }
  0xa5   :  { %75 = vrcp.f32 %v40_v11 }
  0xa6   :  { %77 = vrcp.f32 %v41_v12 }
  0xaf   :  { %v76_v13 = vpop.eup %75 }
  0xb0   :  { %v78_v14 = vpop.eup %77  ;;  %v46_v15 = vmul.f32 %v76_v13, %v32_v5 }
  0xb1   :  { %v47_v16 = vmul.f32 %v78_v14, %v33_v6 }
  0xb2   :  { %48 = vst [vmem:[#allocation5] sm:$0xff] %v46_v15 }
  0xb3   :  { %49 = vst [vmem:[#allocation5 + $0x8] sm:$0xff] %v47_v16 }
  0xb4   :  { %112 = shalt.err (!%p109_p12)
}
  0xb5   :  { %s113_s26 = scalar_lea.hbm %s174_s2, 256 }
  0xb6   :  { %p114_p13 = scmp.ne.s32.totalorder %s174_s2, %s113_s26  ;;  %p117_p0 = scmp.lt.u32.totalorder %s113_s26, %s174_s2 }
  0xb8   :  { %p119_p1 = pnand %p117_p0, %p114_p13 }
  0xba   :  { %122 = shalt.err (!%p119_p1)
}
  0xbb   :  { %59 = dma.vmem_to_hbm [thread:$0]  %s57_s23, 256, %s174_s2, [#allocation4]  }
  0xbc   :  { %125 = dma.done.wait [#allocation4], 256  }
  0xbd   :  { %126 = vsyncadd [#allocation4], 4294967040 }
  0xbe   :  { %63 = vsyncpa [#allocation3], 1 }
  0xbf   :  { %64 = vsyncpa [#allocation4], 1 }

</bundles_post_ra>
